<compile_context>
chip_gen: v6e
topology: v6e:2x2x1
jax: 0.10.0
libtpu: 0.0.40
codegen_flags: <defaults>
</compile_context>

<pallas_src>
import jax
import jax.numpy as jnp
from jax.experimental import pallas as pl
from jax.experimental.pallas import tpu as pltpu  # noqa: F401  (kept for the documented large-size fallback)


def _linear_bias_folded_kernel(x_ref, p_ref, o_ref):
    # x_ref : (M, K)      input rows
    # p_ref : (K+1, N)    packed params: rows [0:K] = W^T, row [K] = c = b @ W^T
    # o_ref : (M, N)
    x = x_ref[...]
    p = p_ref[...]
    K = x.shape[1]
    # Tiny contraction: out[m, n] = sum_k x[m, k] * Wt[k, n] + c[n].
    # K is a small static constant (2): unroll on the VPU with 2-D broadcasts.
    # No MXU pass, no padding. (Gate to jnp.dot/MXU if K*N ever grows beyond
    # ~16x16 — each per-k term costs a cross-lane broadcast on the XLU.)
    acc = p[K:K + 1, :]                       # folded bias row, (1,N) -> bcast (M,N)
    for k in range(K):
        acc = acc + x[:, k:k + 1] * p[k:k + 1, :]   # (M,1)*(1,N) -> (M,N)
    o_ref[...] = acc                          # already float32, no cast needed


def prepare_params(weight, bias):
    """One-time parameter prep (outside the hot path).

    weight: (N, K) torch-layout linear weight
    bias:   (N,)
    Returns a single packed (K+1, N) float32 slab:
      rows [0:K]  = weight.T               (so no per-call transpose)
      row  [K]    = bias_row @ weight.T    (the bias folded through the linear)
    Valid only when N == K (the module adds the length-N bias along the K axis).
    """
    w = jnp.asarray(weight, dtype=jnp.float32)
    b = jnp.asarray(bias, dtype=jnp.float32).reshape(1, -1)
    n, k = w.shape
    assert b.shape[1] == k, "this module requires out_features == in_features"
    wt = w.T                                  # (K, N)
    c = b @ wt                                # (1, N) folded bias
    return jnp.concatenate([wt, c], axis=0)   # (K+1, N)


@jax.jit
def model_forward(x, packed_params):
    """Forward of the PyTorch module: (x + bias) @ weight.T  ==  x @ W^T + b @ W^T.

    x:             (..., K) float32
    packed_params: (K+1, N) float32  (see prepare_params)
    """
    *lead, K = x.shape
    N = packed_params.shape[1]
    assert packed_params.shape[0] == K + 1

    x2d = x.reshape(-1, K)                    # contiguous reshape under jit
    M = x2d.shape[0]

    out = pl.pallas_call(
        _linear_bias_folded_kernel,
        out_shape=jax.ShapeDtypeStruct((M, N), jnp.float32),
        in_specs=[
            pl.BlockSpec((M, K), lambda: (0, 0)),       # full-array blocks:
            pl.BlockSpec((K + 1, N), lambda: (0, 0)),   # block_shape == array dims
        ],
        out_specs=pl.BlockSpec((M, N), lambda: (0, 0)),
        cost_estimate=pl.CostEstimate(
            flops=2 * M * K * N + M * N,
            transcendentals=0,
            bytes_accessed=(M * K + (K + 1) * N + M * N) * 4,
        ),
    )(x2d, packed_params)

    return out.reshape(*lead, N)


if __name__ == "__main__":
    key = jax.random.PRNGKey(0)
    k_x, k_w, k_b = jax.random.split(key, 3)

    # Matches nn.Linear(2, 2) with input (1, 1, 2)
    in_features, out_features = 2, 2
    x = jax.random.normal(k_x, (1, 1, in_features), dtype=jnp.float32)
    bound = 1.0 / jnp.sqrt(jnp.float32(in_features))
    weight = jax.random.uniform(
        k_w, (out_features, in_features), jnp.float32, -bound, bound
    )
    bias = jax.random.uniform(k_b, (out_features,), jnp.float32, -bound, bound)

    # Parameter prep (transpose + bias fold + packing) happens ONCE at init.
    packed = prepare_params(weight, bias)

    out = model_forward(x, packed)
    jax.block_until_ready(out)

    # Reference check in plain JAX (same semantics as the PyTorch module).
    ref = (x + bias) @ weight.T
    assert out.shape == (1, 1, out_features)
    assert jnp.allclose(out, ref, atol=1e-5, rtol=1e-5), (out, ref)

    print("KERNEL_OK")
</pallas_src>

<mosaic_0001>
module attributes {stable_mosaic.version = 11 : i64} {
  func.func @_linear_bias_folded_kernel(%arg0: memref<1x2xf32, #tpu.memory_space<vmem>>, %arg1: memref<3x2xf32, #tpu.memory_space<vmem>>, %arg2: memref<1x2xf32, #tpu.memory_space<vmem>>) attributes {dimension_semantics = [], scalar_prefetch = 0 : i64, scratch_operands = 0 : i64, tpu.core_type = #tpu.core_type<tc>} {
    %c0 = arith.constant 0 : index
    %c0_0 = arith.constant 0 : index
    %0 = vector.load %arg0[%c0, %c0_0] : memref<1x2xf32, #tpu.memory_space<vmem>>, vector<1x2xf32>
    %c0_1 = arith.constant 0 : index
    %c0_2 = arith.constant 0 : index
    %1 = vector.load %arg1[%c0_1, %c0_2] : memref<3x2xf32, #tpu.memory_space<vmem>>, vector<3x2xf32>
    %2 = vector.extract_strided_slice %1 {offsets = [2, 0], sizes = [1, 2], strides = [1, 1]} : vector<3x2xf32> to vector<1x2xf32>
    %3 = vector.extract_strided_slice %0 {offsets = [0, 0], sizes = [1, 1], strides = [1, 1]} : vector<1x2xf32> to vector<1x1xf32>
    %4 = vector.extract_strided_slice %1 {offsets = [0, 0], sizes = [1, 2], strides = [1, 1]} : vector<3x2xf32> to vector<1x2xf32>
    %5 = vector.broadcast %3 : vector<1x1xf32> to vector<1x2xf32>
    %6 = arith.mulf %5, %4 : vector<1x2xf32>
    %7 = arith.addf %2, %6 : vector<1x2xf32>
    %8 = vector.extract_strided_slice %0 {offsets = [0, 1], sizes = [1, 1], strides = [1, 1]} : vector<1x2xf32> to vector<1x1xf32>
    %9 = vector.extract_strided_slice %1 {offsets = [1, 0], sizes = [1, 2], strides = [1, 1]} : vector<3x2xf32> to vector<1x2xf32>
    %10 = vector.broadcast %8 : vector<1x1xf32> to vector<1x2xf32>
    %11 = arith.mulf %10, %9 : vector<1x2xf32>
    %12 = arith.addf %7, %11 : vector<1x2xf32>
    %c0_3 = arith.constant 0 : index
    %c0_4 = arith.constant 0 : index
    %13 = vector.load %arg2[%c0_3, %c0_4] : memref<1x2xf32, #tpu.memory_space<vmem>>, vector<1x2xf32>
    tpu.vector_store %arg2[%c0_3, %c0_4], %12 {strides = array<i32>} : memref<1x2xf32, #tpu.memory_space<vmem>>, vector<1x2xf32>,
    return
  }
}

</mosaic_0001>

<bundles_post_ra>
// kernel: model_forward.1
= control target key start
LH: loop header
LB: loop body
LE: loop exit
PB: predicated region body
PF: predicated region fallthrough
CT: control target
= control target key end

     0   :  { %v84_v1 = vmov 0   ;;  %s111_s0 = inlined_call_operand.vmem [shape: f32[1,2], index: 0, kind: input, shape index: {}]   ;;  %s112_s1 = inlined_call_operand.vmem [shape: f32[3,2], index: 1, kind: input, shape index: {}]   ;;  %s113_s2 = inlined_call_operand.hbm [shape: f32[1,2], index: 2, kind: output, shape index: {}]  }
   0x1   :  { %v12_v0 = vld [vmem:[%s111_s0] sm:$0x1]  ;;  %60 = vset.pattern.permute.xlu0 %v84_v1 }
   0x2   :  { %7 = vsyncpa [#allocation3], 0  ;;  %16 = vperm.xlu0 %60, %v12_v0   ;;  %v85_v2 = vmov 1   ;;  %v19_v3 = vlaneseq  ;;  %v13_v6 = vld [vmem:[%s112_s1] sm:$0x7]  ;;  %s86_s0 = smov [#allocation2]  }
   0x3   :  { %s49_s13 = sshll.u32 %s86_s0, 4  ;;  %vm41_vm0 = vcmask 10242   ;;  %s50_s13 = int_to_ptr.vmem [resolvable:$true] %s49_s13 }
   0x4   :  { %v20_v4 = vshrl.u32 %v19_v3, 7  ;;  %s62_s14 = scalar_lea.vmem %s50_s13, 16  ;;  %s66_s15 = scalar_lea.vmem %s50_s13, 32 }
   0x5   :  { %p63_p0 = scmp.ne.s32.totalorder %s50_s13, %s62_s14  ;;  %p67_p1 = scmp.lt.s32.totalorder %s50_s13, %s50_s13 }
   0x6   :  { %61 = vset.pattern.permute.xlu0 %v85_v2  ;;  %v21_v5 = vsub.s32 0, %v20_v4  ;;  %p68_p2 = scmp.lt.s32.totalorder %s66_s15, %s62_s14 }
   0x7   :  { %29 = vperm.xlu0 %61, %v12_v0  }
   0x8   :  { %p69_p3 = por %p68_p2, %p67_p1 }
   0xa   :  { %p70_p4 = pnand %p69_p3, %p63_p0 }
  0x7d   :  { %v17_v7 = vpop.permute.xlu0 %16 }
  0x7e   :  { %v22_v8 = vrot.slane %v17_v7, %v21_v5 }
  0x80   :  { %v23_v9 = vmul.f32 %v22_v8, %v13_v6 }
  0x82   :  { %v30_v10 = vpop.permute.xlu0 %29  ;;  %v25_v11 = vrot.slane %v23_v9, 6 }
  0x83   :  { %v35_v12 = vrot.slane %v30_v10, %v21_v5 }
  0x84   :  { %v27_v14 = vadd.f32 %v25_v11, %v13_v6 }
  0x85   :  { %v36_v13 = vmul.f32 %v35_v12, %v13_v6 }
  0x87   :  { %v38_v15 = vrot.slane %v36_v13, 7 }
  0x89   :  { %v40_v16 = vadd.f32 %v38_v15, %v27_v14 }
  0x8b   :  { %42 = vst.msk [vmem:[#allocation2 - $0x2] sm:$0x4] %vm41_vm0, %v40_v16 }
  0x8c   :  { %73 = shalt.err (!%p70_p4)
}
  0x8d   :  { %52 = dma.vmem_to_hbm [thread:$0]  %s50_s13, 16, %s113_s2, [#allocation3]  }
  0x8e   :  { %82 = dma.done.wait [#allocation3], 16  }
  0x8f   :  { %83 = vsyncadd [#allocation3], 4294967280 }
  0x90   :  { %56 = vsyncpa [#allocation3], 1 }

</bundles_post_ra>
